<compile_context>
chip_gen: v7x
topology: tpu7x:2x2x1
jax: 0.10.0
libtpu: 0.0.40
codegen_flags: <defaults>
</compile_context>

<pallas_src>
import jax
import jax.numpy as jnp
from jax.experimental import pallas as pl
from jax.experimental.pallas import tpu as pltpu

Z_DIM = 512          # iresnet100 embedding dim (ADDGenerator(512, 3))
F_DIM = 64           # channels of feature_map_t[-1] (mask_head = Conv2d(64,1,1))
C_IMG = 3            # image channels

_VMEM_LIMIT = 32 * 1024 * 1024   # explicit scoped-VMEM budget, safe on v5e/v6e/v7x
_TILE_CAP = 8192                 # lane-tile cap: keeps (F_DIM, tile) intermediates small


def _pick_tile(hw, cap=_TILE_CAP):
    """Largest multiple of 128 that divides hw and is <= cap; else the full hw."""
    best = None
    t = 128
    while t <= min(hw, cap):
        if hw % t == 0:
            best = t
        t += 128
    return best if best is not None else hw


# --------------------------------------------------------------------------
# Kernel 1: per-batch channel sums of the source image (reduction over HW).
# The identity-branch tail (Normalize fold, 3->512 projection, F.normalize,
# z_id modulation) is a few-hundred-FLOP matter and is done in plain JAX.
# --------------------------------------------------------------------------
def _pool_kernel(src_ref, sum_ref):
    """src_ref: (C, tile) slice of one batch element; sum_ref: (C, 1) accumulator."""
    @pl.when(pl.program_id(1) == 0)
    def _():
        sum_ref[...] = jnp.zeros_like(sum_ref)
    sum_ref[...] += jnp.sum(src_ref[...], axis=-1, keepdims=True)


# --------------------------------------------------------------------------
# Kernel 2: attribute encoder stand-in + generator stand-in + exact
# mask_head(sigmoid) + exact mask blend, per (batch, HW-tile) grid point.
# --------------------------------------------------------------------------
def _swap_kernel(tgt_ref, we_ref, be_ref, wgm_ref, bgm_ref, out_ref):
    """
    tgt_ref : (C, T)        target image tile (lane-dense on T)
    we_ref  : (F_DIM, C)    E stand-in weight      (feature_map_t[-1], 64 ch)
    be_ref  : (F_DIM, 1)    E stand-in bias
    wgm_ref : (C+1, F_DIM)  packed [W_g ; W_mask_head]   (mask_head row is exact Conv2d(64,1,1))
    bgm_ref : (C+1, 1)      packed per-batch bias: [b_g + z_id@W_z ; b_mask]
    out_ref : (C, T)
    """
    tgt = tgt_ref[...]                                                   # (3, T)

    # MultilevelAttributesEncoder stand-in -> 64-channel feature map tile
    feat = jnp.dot(we_ref[...], tgt,
                   preferred_element_type=jnp.float32) + be_ref[...]     # (64, T)
    feat = jnp.maximum(feat, 0.0)

    # Packed heads: rows 0..2 = ADDGenerator stand-in (identity-modulated bias,
    # folded per-batch into bgm outside the HW loop), row 3 = mask_head logits.
    gm = jnp.dot(wgm_ref[...], feat,
                 preferred_element_type=jnp.float32) + bgm_ref[...]      # (4, T)

    g = jnp.tanh(gm[:C_IMG, :])                                          # (3, T)
    mask = jax.nn.sigmoid(gm[C_IMG:C_IMG + 1, :])                        # (1, T) exact

    # output = output_g * mask + target_img * (1 - mask)   (exact)
    out_ref[...] = g * mask + tgt * (1.0 - mask)


def init_params(key):
    ks = jax.random.split(key, 5)
    w_g = jax.random.normal(ks[2], (C_IMG, F_DIM), jnp.float32) * 0.1    # G stand-in
    w_m = jax.random.normal(ks[4], (1, F_DIM), jnp.float32) * 0.1        # mask_head weight
    return {
        "W_id": jax.random.normal(ks[0], (C_IMG, Z_DIM), jnp.float32) * 0.1,  # Z_e stand-in
        "b_id": jnp.zeros((Z_DIM,), jnp.float32),
        "W_e":  jax.random.normal(ks[1], (F_DIM, C_IMG), jnp.float32) * 0.1,  # E stand-in
        "b_e":  jnp.full((F_DIM, 1), 0.01, jnp.float32),
        "W_gm": jnp.concatenate([w_g, w_m], axis=0),                          # (4, 64) packed
        "b_g":  jnp.zeros((C_IMG,), jnp.float32),
        "b_m":  jnp.zeros((1,), jnp.float32),
        "W_z":  jax.random.normal(ks[3], (Z_DIM, C_IMG), jnp.float32) * 0.05, # id modulation
    }


def blendswap_forward(target_nchw, source_nchw, params):
    B, C, H, W = target_nchw.shape
    HW = H * W
    # NCHW -> (B, C, HW): pure reshape, no transpose / extra HBM pass.
    tgt = target_nchw.reshape(B, C, HW).astype(jnp.float32)
    src = source_nchw.reshape(B, C, HW).astype(jnp.float32)

    tile = _pick_tile(HW)
    n_t = HW // tile

    # ---- identity branch: stream source once, reduce to per-channel sums ----
    sums = pl.pallas_call(
        _pool_kernel,
        out_shape=jax.ShapeDtypeStruct((B, C, 1), jnp.float32),
        grid_spec=pltpu.PrefetchScalarGridSpec(
            num_scalar_prefetch=0,
            grid=(B, n_t),                       # reduction axis last
            in_specs=[
                pl.BlockSpec((pl.Squeezed(), C, tile), lambda b, t: (b, 0, t)),
            ],
            out_specs=pl.BlockSpec((pl.Squeezed(), C, 1), lambda b, t: (b, 0, 0)),
        ),
        compiler_params=pltpu.CompilerParams(
            dimension_semantics=("parallel", "arbitrary"),
            vmem_limit_bytes=_VMEM_LIMIT),
    )(src)

    # Tiny tail in plain JAX (a few hundred FLOPs per batch element).
    pooled = sums[:, :, 0] / float(HW)                       # global average pool
    pooled = (pooled - 0.5) / 0.5                            # Normalize(0.5,0.5) folded (exact)
    z = pooled @ params["W_id"] + params["b_id"]             # (B, 512)  Z_e stand-in
    nrm = jnp.sqrt(jnp.sum(z * z, axis=-1, keepdims=True))
    z_id = z / jnp.maximum(nrm, 1e-12)                       # F.normalize (exact, eps=1e-12)

    # Hoist the identity modulation out of the per-tile kernel: fold into b_g.
    zmod = z_id @ params["W_z"]                              # (B, 3)
    bias_g = params["b_g"][None, :] + zmod                   # (B, 3)
    bias_m = jnp.broadcast_to(params["b_m"][None, :], (B, 1))
    bias_gm = jnp.concatenate([bias_g, bias_m], axis=-1)[:, :, None]   # (B, 4, 1)

    # ---- attribute / generator / mask / blend branch (tiled over HW) ----
    out_flat = pl.pallas_call(
        _swap_kernel,
        out_shape=jax.ShapeDtypeStruct((B, C, HW), jnp.float32),
        grid_spec=pltpu.PrefetchScalarGridSpec(
            num_scalar_prefetch=0,
            grid=(B, n_t),
            in_specs=[
                pl.BlockSpec((pl.Squeezed(), C, tile), lambda b, t: (b, 0, t)),
                pl.BlockSpec((F_DIM, C), lambda b, t: (0, 0)),
                pl.BlockSpec((F_DIM, 1), lambda b, t: (0, 0)),
                pl.BlockSpec((C + 1, F_DIM), lambda b, t: (0, 0)),
                pl.BlockSpec((pl.Squeezed(), C + 1, 1), lambda b, t: (b, 0, 0)),
            ],
            out_specs=pl.BlockSpec((pl.Squeezed(), C, tile), lambda b, t: (b, 0, t)),
        ),
        compiler_params=pltpu.CompilerParams(
            dimension_semantics=("parallel", "parallel"),
            vmem_limit_bytes=_VMEM_LIMIT),
    )(tgt, params["W_e"], params["b_e"], params["W_gm"], bias_gm)

    # back to NCHW (pure reshape, contiguous)
    return out_flat.reshape(B, C, H, W)


if __name__ == "__main__":
    key = jax.random.PRNGKey(0)
    k_t, k_s, k_p = jax.random.split(key, 3)

    B, C, H, W = 2, 3, 16, 16
    target_img = jax.random.uniform(k_t, (B, C, H, W), jnp.float32)
    source_img = jax.random.uniform(k_s, (B, C, H, W), jnp.float32)
    params = init_params(k_p)

    fwd = jax.jit(blendswap_forward)
    out = fwd(target_img, source_img, params)
    out = jax.block_until_ready(out)

    assert out.shape == (B, C, H, W), out.shape
    assert out.dtype == jnp.float32
    assert bool(jnp.all(jnp.isfinite(out)))
    print("KERNEL_OK")
</pallas_src>

<mosaic_0001>
module attributes {stable_mosaic.version = 11 : i64} {
  func.func @_pool_kernel(%arg0: i32, %arg1: i32, %arg2: memref<1x3x256xf32, #tpu.memory_space<vmem>>, %arg3: memref<1x3x1xf32, #tpu.memory_space<vmem>>) attributes {dimension_semantics = [#tpu.dimension_semantics<parallel>, #tpu.dimension_semantics<arbitrary>], iteration_bounds = array<i64: 2, 1>, scalar_prefetch = 0 : i64, scratch_operands = 0 : i64, tpu.core_type = #tpu.core_type<tc>, window_params = [{transform_indices = @transform_0, window_bounds = array<i64: 1, 3, 256>}, {transform_indices = @transform_1, window_bounds = array<i64: 1, 3, 1>}]} {
    %c0_i32 = arith.constant 0 : i32
    %0 = arith.cmpi eq, %arg1, %c0_i32 : i32
    %1 = arith.extui %0 : i1 to i32
    %c0_i32_0 = arith.constant 0 : i32
    %2 = arith.cmpi ne, %1, %c0_i32_0 : i32
    scf.if %2 {
      %cst_9 = arith.constant 0.000000e+00 : f32
      %13 = vector.broadcast %cst_9 : f32 to vector<3x1xf32>
      %c0_10 = arith.constant 0 : index
      %c0_11 = arith.constant 0 : index
      %c0_12 = arith.constant 0 : index
      %14 = vector.load %arg3[%c0_10, %c0_11, %c0_12] : memref<1x3x1xf32, #tpu.memory_space<vmem>>, vector<1x3x1xf32>
      %15 = vector.shape_cast %14 : vector<1x3x1xf32> to vector<3x1xf32>
      %16 = vector.shape_cast %13 : vector<3x1xf32> to vector<1x3x1xf32>
      tpu.vector_store %arg3[%c0_10, %c0_11, %c0_12], %16 {strides = array<i32>} : memref<1x3x1xf32, #tpu.memory_space<vmem>>, vector<1x3x1xf32>,
    } else {
    }
    %c0 = arith.constant 0 : index
    %c0_1 = arith.constant 0 : index
    %c0_2 = arith.constant 0 : index
    %3 = vector.load %arg3[%c0, %c0_1, %c0_2] : memref<1x3x1xf32, #tpu.memory_space<vmem>>, vector<1x3x1xf32>
    %4 = vector.shape_cast %3 : vector<1x3x1xf32> to vector<3x1xf32>
    %c0_3 = arith.constant 0 : index
    %c0_4 = arith.constant 0 : index
    %c0_5 = arith.constant 0 : index
    %5 = vector.load %arg2[%c0_3, %c0_4, %c0_5] : memref<1x3x256xf32, #tpu.memory_space<vmem>>, vector<1x3x256xf32>
    %6 = vector.shape_cast %5 : vector<1x3x256xf32> to vector<3x256xf32>
    %cst = arith.constant dense<0.000000e+00> : vector<3xf32>
    %7 = vector.multi_reduction <add>, %6, %cst [1] : vector<3x256xf32> to vector<3xf32>
    %8 = vector.shape_cast %7 : vector<3xf32> to vector<3x1xf32>
    %9 = arith.addf %4, %8 : vector<3x1xf32>
    %c0_6 = arith.constant 0 : index
    %c0_7 = arith.constant 0 : index
    %c0_8 = arith.constant 0 : index
    %10 = vector.load %arg3[%c0_6, %c0_7, %c0_8] : memref<1x3x1xf32, #tpu.memory_space<vmem>>, vector<1x3x1xf32>
    %11 = vector.shape_cast %10 : vector<1x3x1xf32> to vector<3x1xf32>
    %12 = vector.shape_cast %9 : vector<3x1xf32> to vector<1x3x1xf32>
    tpu.vector_store %arg3[%c0_6, %c0_7, %c0_8], %12 {strides = array<i32>} : memref<1x3x1xf32, #tpu.memory_space<vmem>>, vector<1x3x1xf32>,
    return
  }
  func.func @transform_0(%arg0: i32, %arg1: i32) -> (i32, i32, i32) {
    %c0_i32 = arith.constant 0 : i32
    %c0_i32_0 = arith.constant 0 : i32
    return %arg0, %c0_i32, %arg1 : i32, i32, i32
  }
  func.func @transform_1(%arg0: i32, %arg1: i32) -> (i32, i32, i32) {
    %c0_i32 = arith.constant 0 : i32
    %c0_i32_0 = arith.constant 0 : i32
    %c0_i32_1 = arith.constant 0 : i32
    return %arg0, %c0_i32, %c0_i32_0 : i32, i32, i32
  }
}

module attributes {stable_mosaic.version = 11 : i64} {
  func.func @_swap_kernel(%arg0: i32, %arg1: i32, %arg2: memref<1x3x256xf32, #tpu.memory_space<vmem>>, %arg3: memref<64x3xf32, #tpu.memory_space<vmem>>, %arg4: memref<64x1xf32, #tpu.memory_space<vmem>>, %arg5: memref<4x64xf32, #tpu.memory_space<vmem>>, %arg6: memref<1x4x1xf32, #tpu.memory_space<vmem>>, %arg7: memref<1x3x256xf32, #tpu.memory_space<vmem>>) attributes {dimension_semantics = [#tpu.dimension_semantics<parallel>, #tpu.dimension_semantics<parallel>], iteration_bounds = array<i64: 2, 1>, scalar_prefetch = 0 : i64, scratch_operands = 0 : i64, tpu.core_type = #tpu.core_type<tc>, window_params = [{transform_indices = @transform_0, window_bounds = array<i64: 1, 3, 256>}, {pipeline_mode = #tpu.pipeline_mode<synchronous>, transform_indices = @transform_1, window_bounds = array<i64: 64, 3>}, {pipeline_mode = #tpu.pipeline_mode<synchronous>, transform_indices = @transform_2, window_bounds = array<i64: 64, 1>}, {pipeline_mode = #tpu.pipeline_mode<synchronous>, transform_indices = @transform_3, window_bounds = array<i64: 4, 64>}, {transform_indices = @transform_4, window_bounds = array<i64: 1, 4, 1>}, {transform_indices = @transform_5, window_bounds = array<i64: 1, 3, 256>}]} {
    %c0 = arith.constant 0 : index
    %c0_0 = arith.constant 0 : index
    %c0_1 = arith.constant 0 : index
    %0 = vector.load %arg2[%c0, %c0_0, %c0_1] : memref<1x3x256xf32, #tpu.memory_space<vmem>>, vector<1x3x256xf32>
    %1 = vector.shape_cast %0 : vector<1x3x256xf32> to vector<3x256xf32>
    %c0_2 = arith.constant 0 : index
    %c0_3 = arith.constant 0 : index
    %2 = vector.load %arg3[%c0_2, %c0_3] : memref<64x3xf32, #tpu.memory_space<vmem>>, vector<64x3xf32>
    %cst = arith.constant dense<0.000000e+00> : vector<64x256xf32>
    %3 = tpu.matmul %2, %1, %cst {dimension_numbers = #tpu.dot_dimension_numbers<[1], [0], [0], [1], [0, 0, 1, 1], [], []>} : vector<64x3xf32>, vector<3x256xf32>, vector<64x256xf32> -> vector<64x256xf32>
    %c0_4 = arith.constant 0 : index
    %c0_5 = arith.constant 0 : index
    %4 = vector.load %arg4[%c0_4, %c0_5] : memref<64x1xf32, #tpu.memory_space<vmem>>, vector<64x1xf32>
    %5 = vector.broadcast %4 : vector<64x1xf32> to vector<64x256xf32>
    %6 = arith.addf %3, %5 : vector<64x256xf32>
    %cst_6 = arith.constant 0.000000e+00 : f32
    %7 = vector.broadcast %cst_6 : f32 to vector<64x256xf32>
    %8 = arith.maximumf %6, %7 : vector<64x256xf32>
    %c0_7 = arith.constant 0 : index
    %c0_8 = arith.constant 0 : index
    %9 = vector.load %arg5[%c0_7, %c0_8] : memref<4x64xf32, #tpu.memory_space<vmem>>, vector<4x64xf32>
    %cst_9 = arith.constant dense<0.000000e+00> : vector<4x256xf32>
    %10 = tpu.matmul %9, %8, %cst_9 {dimension_numbers = #tpu.dot_dimension_numbers<[1], [0], [0], [1], [0, 0, 1, 1], [], []>} : vector<4x64xf32>, vector<64x256xf32>, vector<4x256xf32> -> vector<4x256xf32>
    %c0_10 = arith.constant 0 : index
    %c0_11 = arith.constant 0 : index
    %c0_12 = arith.constant 0 : index
    %11 = vector.load %arg6[%c0_10, %c0_11, %c0_12] : memref<1x4x1xf32, #tpu.memory_space<vmem>>, vector<1x4x1xf32>
    %12 = vector.shape_cast %11 : vector<1x4x1xf32> to vector<4x1xf32>
    %13 = vector.broadcast %12 : vector<4x1xf32> to vector<4x256xf32>
    %14 = arith.addf %10, %13 : vector<4x256xf32>
    %15 = vector.extract_strided_slice %14 {offsets = [0, 0], sizes = [3, 256], strides = [1, 1]} : vector<4x256xf32> to vector<3x256xf32>
    %16 = math.tanh %15 : vector<3x256xf32>
    %17 = vector.extract_strided_slice %14 {offsets = [3, 0], sizes = [1, 256], strides = [1, 1]} : vector<4x256xf32> to vector<1x256xf32>
    %18 = arith.negf %17 : vector<1x256xf32>
    %19 = math.exp %18 : vector<1x256xf32>
    %cst_13 = arith.constant 1.000000e+00 : f32
    %20 = vector.broadcast %cst_13 : f32 to vector<1x256xf32>
    %21 = arith.addf %20, %19 : vector<1x256xf32>
    %22 = arith.divf %20, %21 : vector<1x256xf32>
    %23 = vector.broadcast %22 : vector<1x256xf32> to vector<3x256xf32>
    %24 = arith.mulf %16, %23 : vector<3x256xf32>
    %cst_14 = arith.constant 1.000000e+00 : f32
    %25 = vector.broadcast %cst_14 : f32 to vector<1x256xf32>
    %26 = arith.subf %25, %22 : vector<1x256xf32>
    %27 = vector.broadcast %26 : vector<1x256xf32> to vector<3x256xf32>
    %28 = arith.mulf %1, %27 : vector<3x256xf32>
    %29 = arith.addf %24, %28 : vector<3x256xf32>
    %c0_15 = arith.constant 0 : index
    %c0_16 = arith.constant 0 : index
    %c0_17 = arith.constant 0 : index
    %30 = vector.load %arg7[%c0_15, %c0_16, %c0_17] : memref<1x3x256xf32, #tpu.memory_space<vmem>>, vector<1x3x256xf32>
    %31 = vector.shape_cast %30 : vector<1x3x256xf32> to vector<3x256xf32>
    %32 = vector.shape_cast %29 : vector<3x256xf32> to vector<1x3x256xf32>
    tpu.vector_store %arg7[%c0_15, %c0_16, %c0_17], %32 {strides = array<i32>} : memref<1x3x256xf32, #tpu.memory_space<vmem>>, vector<1x3x256xf32>,
    return
  }
  func.func @transform_0(%arg0: i32, %arg1: i32) -> (i32, i32, i32) {
    %c0_i32 = arith.constant 0 : i32
    %c0_i32_0 = arith.constant 0 : i32
    return %arg0, %c0_i32, %arg1 : i32, i32, i32
  }
  func.func @transform_1(%arg0: i32, %arg1: i32) -> (i32, i32) {
    %c0_i32 = arith.constant 0 : i32
    %c0_i32_0 = arith.constant 0 : i32
    %c0_i32_1 = arith.constant 0 : i32
    return %c0_i32, %c0_i32_0 : i32, i32
  }
  func.func @transform_2(%arg0: i32, %arg1: i32) -> (i32, i32) {
    %c0_i32 = arith.constant 0 : i32
    %c0_i32_0 = arith.constant 0 : i32
    %c0_i32_1 = arith.constant 0 : i32
    return %c0_i32, %c0_i32_0 : i32, i32
  }
  func.func @transform_3(%arg0: i32, %arg1: i32) -> (i32, i32) {
    %c0_i32 = arith.constant 0 : i32
    %c0_i32_0 = arith.constant 0 : i32
    %c0_i32_1 = arith.constant 0 : i32
    return %c0_i32, %c0_i32_0 : i32, i32
  }
  func.func @transform_4(%arg0: i32, %arg1: i32) -> (i32, i32, i32) {
    %c0_i32 = arith.constant 0 : i32
    %c0_i32_0 = arith.constant 0 : i32
    %c0_i32_1 = arith.constant 0 : i32
    return %arg0, %c0_i32, %c0_i32_0 : i32, i32, i32
  }
  func.func @transform_5(%arg0: i32, %arg1: i32) -> (i32, i32, i32) {
    %c0_i32 = arith.constant 0 : i32
    %c0_i32_0 = arith.constant 0 : i32
    return %arg0, %c0_i32, %arg1 : i32, i32, i32
  }
}

</mosaic_0001>

<bundles_post_ra>
// kernel: blendswap_forward.2
= control target key start
LH: loop header
LB: loop body
LE: loop exit
PB: predicated region body
PF: predicated region fallthrough
CT: control target
= control target key end

     0   :  { %s302_s6 = smov 0   ;;  %s304_s7 = smov 0   ;;  %s334_s0 = inlined_call_operand.vmem [shape: f32[2,3,256], index: 0, kind: input, shape index: {}]   ;;  %s335_s1 = inlined_call_operand.vmem [shape: f32[2,3,1], index: 1, kind: output, shape index: {}]  }
   0x1   :  { %s306_s8 = smov 0  }
   0x2 LB: > { %s23_s9 = sadd.s32 1, %s285_s7  ;;  %p234_p0 = scmp.ge.s32.totalorder %s289_s8, 1  ;;  %s289_s8 = sphi %s306_s8, %s11_s8   ;;  %s285_s7 = sphi %s304_s7, %s337_s7   ;;  %s281_s6 = sphi %s302_s6, %s336_s6  }
   0x3   : > { %p25_p1 = scmp.ge.s32.totalorder %s23_s9, 2  ;;  %p106_p2 = scmp.lt.s32.totalorder %s289_s8, 3 }
   0x5   : > { %s339_s9 = smov (%p25_p1, %s23_s9), 0  ;;  %p107_p3 = pnand %p234_p0, %p106_p2 }
   0x6   : > { %p130_p4 = scmp.lt.s32.totalorder (!%p107_p3), %s281_s6, 1  ;;  %vm147_vm0 = vcmask (!%p107_p3), 2048   ;;  %vm154_vm1 = vcmask (!%p107_p3), 1042432   ;;  %v291_v1 = vmov (!%p107_p3), 0.0  }
   0x7   : > { %110 = sbr.rel (%p107_p3) target bundleno = 168 (0xa8), region = 24 }
   0xe   : > { %s341_s6 = smov (!%p130_p4, %s281_s6), 1 }
   0xf   : > { %s240_s10 = sshll.u32 %s341_s6, 3  ;;  %s237_s11 = sshll.u32 %s341_s6, 2 }
  0x10   : > { %s137_s14 = scalar_lea.vmem %s334_s0, %s240_s10  ;;  %s142_s17 = scalar_lea.vmem %s335_s1, %s237_s11 }
  0x11   : > { %v150_v0 = vld [vmem:[%s137_s14] sm:$0x77]  ;;  %148 = vst.msk [vmem:[%s142_s17] sm:$0x7] %vm147_vm0, %v291_v1 }
  0x12   : > { %v152_v2 = vcombine.high %v150_v0, %v150_v0  ;;  %v155_v3 = vsel %vm154_vm1, %v150_v0, 0.0 }
  0x14   : > { %v156_v4 = vsel %vm154_vm1, %v152_v2, 0.0 }
  0x15   : > { %v157_v5 = vadd.f32 %v156_v4, %v155_v3 }
  0x17   : > { %158 = vadd.xlane.f32.xlu0 %v157_v5 }
  0x18   : > { %v149_v6 = vld [vmem:[%s142_s17] sm:$0x7] }
  0xa4   : > { %v159_v7 = vpop.xlane.xlu0 %158 }
  0xa5   : > { %v160_v8 = vadd.f32 %v159_v7, %v149_v6 }
  0xa7   : > { %162 = vst.msk [vmem:[%s142_s17] sm:$0x7] %vm147_vm0, %v160_v8 }
  0xa8 PF: > { %s11_s8 = sadd.s32 1, %s289_s8   ;;  %s336_s6 = smov %s285_s7 }
  0xa9   : > { %p8_p5 = scmp.ge.s32.totalorder %s11_s8, 4   ;;  %s337_s7 = smov %s339_s9 }
  0xab   :  { %10 = sbr.rel (!%p8_p5) target bundleno = 2 (0x2), region = 58 }

// kernel: blendswap_forward.3
= control target key start
LH: loop header
LB: loop body
LE: loop exit
PB: predicated region body
PF: predicated region fallthrough
CT: control target
= control target key end

     0   :  { %s869_s18 = smov 0   ;;  %s871_s19 = smov 0   ;;  %s978_s0 = inlined_call_operand.vmem [shape: f32[2,3,256], index: 0, kind: input, shape index: {}]   ;;  %s979_s1 = inlined_call_operand.vmem [shape: f32[64,3], index: 1, kind: input, shape index: {}]   ;;  %s980_s2 = inlined_call_operand.vmem [shape: f32[64,1], index: 2, kind: input, shape index: {}]   ;;  %s981_s3 = inlined_call_operand.vmem [shape: f32[4,64], index: 3, kind: input, shape index: {}]   ;;  %s982_s4 = inlined_call_operand.vmem [shape: f32[2,4,1], index: 4, kind: input, shape index: {}]   ;;  %s983_s5 = inlined_call_operand.vmem [shape: f32[2,3,256], index: 5, kind: output, shape index: {}]  }
   0x1   :  { %s873_s20 = smov 0  }
   0x2 LB: > { %s27_s21 = sadd.s32 1, %s831_s19  ;;  %p733_p0 = scmp.ge.s32.totalorder %s835_s20, 1  ;;  %s835_s20 = sphi %s873_s20, %s15_s20   ;;  %s831_s19 = sphi %s871_s19, %s985_s19   ;;  %s827_s18 = sphi %s869_s18, %s984_s18  }
   0x3   : > { %p29_p1 = scmp.ge.s32.totalorder %s27_s21, 2  ;;  %p217_p2 = scmp.lt.s32.totalorder %s835_s20, 3 }
   0x5   : > { %s987_s21 = smov (%p29_p1, %s27_s21), 0  ;;  %p218_p3 = pnand %p733_p0, %p217_p2 }
   0x6   : > { %p258_p4 = scmp.lt.s32.totalorder (!%p218_p3), %s827_s18, 1  ;;  %v837_v0 = vmov (!%p218_p3), 0.0   ;;  %v838_v1 = vmov (!%p218_p3), 0   ;;  %v290_v2 = vld [vmem:[%s980_s2] sm:$0xff] (!%p218_p3)  ;;  %v292_v3 = vld [vmem:[%s980_s2 + $0x10] sm:$0xff] (!%p218_p3)  ;;  %v291_v4 = vld [vmem:[%s980_s2 + $0x8] sm:$0xff] (!%p218_p3) }
   0x7   : > { %221 = sbr.rel (%p218_p3) target bundleno = 529 (0x211), region = 40  ;;  %434 = vmatprep.mubr.f32.mxu0 (!%p218_p3), %v837_v0  ;;  %574 = vmatprep.mubr.f32.mxu1 (!%p218_p3), %v837_v0  ;;  %v293_v5 = vld [vmem:[%s980_s2 + $0x18] sm:$0xff] (!%p218_p3)  ;;  %vm365_vm0 = vcmask (!%p218_p3), 1042432   ;;  %v282_v8 = vld [vmem:[%s979_s1] sm:$0xff] (!%p218_p3)  ;;  %vm340_vm1 = vcmask (!%p218_p3), 23552   ;;  %v295_v10 = vld [vmem:[%s980_s2 + $0x28] sm:$0xff] (!%p218_p3) }
   0x8   : > { %798 = vset.pattern.permute.xlu0 (!%p218_p3), %v838_v1  ;;  %799 = vset.pattern.permute.xlu1 (!%p218_p3), %v838_v1  ;;  %v294_v9 = vld [vmem:[%s980_s2 + $0x20] sm:$0xff] (!%p218_p3)  ;;  %v283_v11 = vld [vmem:[%s979_s1 + $0x8] sm:$0xff] (!%p218_p3)  ;;  %v296_v12 = vld [vmem:[%s980_s2 + $0x30] sm:$0xff] (!%p218_p3)  ;;  %vm506_vm2 = vcmask (!%p218_p3), 523264  }
   0x9   : > { %300 = vperm.xlu0 (!%p218_p3), %798, %v290_v2   ;;  %310 = vperm.xlu1 (!%p218_p3), %799, %v292_v3   ;;  %v297_v13 = vld [vmem:[%s980_s2 + $0x38] sm:$0xff] (!%p218_p3)  ;;  %v284_v14 = vld [vmem:[%s979_s1 + $0x10] sm:$0xff] (!%p218_p3)  ;;  %v286_v17 = vld [vmem:[%s979_s1 + $0x20] sm:$0xff] (!%p218_p3) }
   0xa   : > { %v285_v16 = vld [vmem:[%s979_s1 + $0x18] sm:$0xff] (!%p218_p3)  ;;  %v287_v18 = vld [vmem:[%s979_s1 + $0x28] sm:$0xff] (!%p218_p3)  ;;  %v288_v19 = vld [vmem:[%s979_s1 + $0x30] sm:$0xff] (!%p218_p3) }
   0xb   : > { %v289_v20 = vld [vmem:[%s979_s1 + $0x38] sm:$0xff] (!%p218_p3) }
   0xd   : > { %305 = vperm.xlu0 (!%p218_p3), %798, %v291_v4   ;;  %315 = vperm.xlu1 (!%p218_p3), %799, %v293_v5  }
   0xe   : > { %s989_s18 = smov (!%p258_p4, %s827_s18), 1 }
   0xf   : > { %s754_s26 = sshll.u32 %s989_s18, 3  ;;  %s736_s15 = sshll.u32 %s989_s18, 2 }
  0x10   : > { %s265_s29 = scalar_lea.vmem %s978_s0, %s754_s26  ;;  %s270_s27 = scalar_lea.vmem %s982_s4, %s736_s15 }
  0x11   : > { %v907_v6 = vld [vmem:[%s265_s29] sm:$0x77]  ;;  %320 = vperm.xlu0 %798, %v294_v9   ;;  %325 = vperm.xlu1 %799, %v295_v10   ;;  %s279_s25 = scalar_lea.vmem %s983_s5, %s754_s26 }
  0x12   : > { %v339_v7 = vcombine.high %v907_v6, %v907_v6  ;;  %v500_v15 = vld [vmem:[%s270_s27] sm:$0xf] }
  0x14   : > { %739 = vmatprep.subr.msk.mxu0 %vm365_vm0, %v339_v7 }
  0x15   : > { %740 = vmatpush1.msk.msra.mxu0 %vm365_vm0, %v907_v6  ;;  %330 = vperm.xlu0 %798, %v296_v12  }
  0x16   : > { %741 = vmatmul.mubr.msk.f32.vlgmr.msra.gmra.mrb[0].mxu0 %vm340_vm1, %v282_v8  ;;  %335 = vperm.xlu1 %799, %v297_v13  }
  0x17   : > { %440 = vmatprep.mubr.f32.mxu0 %v837_v0 }
  0x19   : > { %503 = vperm.xlu0 %798, %v500_v15  }
  0x1a   : > { %742 = vmatmul.mubr.msk.f32.gmra.mrb[2].mxu0 %vm340_vm1, %v283_v11 }
  0x1b   : > { %446 = vmatprep.mubr.f32.mxu0 %v837_v0 }
  0x1e   : > { %743 = vmatmul.mubr.msk.f32.gmra.mrb[4].mxu0 %vm340_vm1, %v284_v14 }
  0x1f   : > { %452 = vmatprep.mubr.f32.mxu0 %v837_v0 }
  0x22   : > { %744 = vmatmul.mubr.msk.f32.gmra.mrb[6].mxu0 %vm340_vm1, %v285_v16 }
  0x23   : > { %458 = vmatprep.mubr.f32.mxu0 %v837_v0 }
  0x26   : > { %745 = vmatmul.mubr.msk.f32.gmra.mrb[8].mxu0 %vm340_vm1, %v286_v17 }
  0x27   : > { %464 = vmatprep.mubr.f32.mxu0 %v837_v0 }
  0x2a   : > { %746 = vmatmul.mubr.msk.f32.gmra.mrb[10].mxu0 %vm340_vm1, %v287_v18 }
  0x2b   : > { %470 = vmatprep.mubr.f32.mxu0 %v837_v0 }
  0x2e   : > { %747 = vmatmul.mubr.msk.f32.gmra.mrb[12].mxu0 %vm340_vm1, %v288_v19 }
  0x2f   : > { %476 = vmatprep.mubr.f32.mxu0 %v837_v0 }
  0x32   : > { %748 = vmatmul.mubr.msk.f32.gmra.mrb[14].mxu0 %vm340_vm1, %v289_v20 }
  0x88   : > { %v301_v21 = vpop.permute.xlu0 %300  ;;  %v311_v30 = vpop.permute.xlu1 %310 }
  0x8c   : > { %v306_v25 = vpop.permute.xlu0 %305  ;;  %v316_v41 = vpop.permute.xlu1 %315 }
  0x90   : > { %v321_v54 = vpop.permute.xlu0 %320  ;;  %v326_v57 = vpop.permute.xlu1 %325 }
  0x94   : > { %v331_v7 = vpop.permute.xlu0 %330 }
  0x95   : > { %v336_v10 = vpop.permute.xlu1 %335 }
  0xe9   : > { %v436_v22 = vpop.f32.mrb[0].mxu0 }
  0xea   : > { %v438_v23 = vpop.f32.mrb[1].mxu0  ;;  %v437_v24 = vadd.f32 %v436_v22, %v301_v21  ;;  %v499_v22 = vld [vmem:[%s981_s3] sm:$0xf] }
  0xeb   : > { %v439_v26 = vadd.f32 %v438_v23, %v301_v21  ;;  %v504_v23 = vpop.permute.xlu0 %503 }
  0xec   : > { %v483_v32 = vmax.f32 %v437_v24, 0.0 }
  0xed   : > { %v442_v27 = vpop.f32.mrb[2].mxu0  ;;  %v484_v34 = vmax.f32 %v439_v26, 0.0 }
  0xee   : > { %v443_v28 = vadd.f32 %v442_v27, %v306_v25  ;;  %v444_v29 = vpop.f32.mrb[3].mxu0 }
  0xef   : > { %v445_v31 = vadd.f32 %v444_v29, %v306_v25 }
  0xf0   : > { %v485_v33 = vmax.f32 %v443_v28, 0.0 }
  0xf1   : > { %v486_v35 = vmax.f32 %v445_v31, 0.0  ;;  %v448_v36 = vpop.f32.mrb[4].mxu0 }
  0xf2   : > { %v450_v37 = vpop.f32.mrb[5].mxu0  ;;  %v758_v38 = vpack.c.bf16 %v485_v33, %v483_v32  ;;  %v449_v40 = vadd.f32 %v448_v36, %v311_v30 }
  0xf3   : > { %v756_v39 = vpack.c.bf16 %v486_v35, %v484_v34  ;;  %v451_v42 = vadd.f32 %v450_v37, %v311_v30  ;;  %v595_v34 = vlaneseq }
  0xf4   : > { %v487_v47 = vmax.f32 %v449_v40, 0.0 }
  0xf5   : > { %v454_v43 = vpop.f32.mrb[6].mxu0  ;;  %757 = vmatprep.subr.bf16.mxu1 %v756_v39  ;;  %v488_v49 = vmax.f32 %v451_v42, 0.0  ;;  %v596_v35 = vshrl.u32 %v595_v34, 7 }
  0xf6   : > { %v455_v44 = vadd.f32 %v454_v43, %v316_v41  ;;  %v456_v45 = vpop.f32.mrb[7].mxu0  ;;  %759 = vmatpush1.bf16.msra.mxu1 %v758_v38 }
  0xf7   : > { %v457_v46 = vadd.f32 %v456_v45, %v316_v41  ;;  %v597_v37 = vsub.s32 3, %v596_v35 }
  0xf8   : > { %v489_v48 = vmax.f32 %v455_v44, 0.0 }
  0xf9   : > { %v490_v50 = vmax.f32 %v457_v46, 0.0  ;;  %v460_v51 = vpop.f32.mrb[8].mxu0 }
  0xfa   : > { %v762_v52 = vpack.c.bf16 %v489_v48, %v487_v47  ;;  %v462_v53 = vpop.f32.mrb[9].mxu0  ;;  %v461_v56 = vadd.f32 %v460_v51, %v321_v54 }
  0xfb   : > { %v760_v55 = vpack.c.bf16 %v490_v50, %v488_v49  ;;  %v463_v58 = vadd.f32 %v462_v53, %v321_v54 }
  0xfc   : > { %v491_v63 = vmax.f32 %v461_v56, 0.0 }
  0xfd   : > { %v466_v59 = vpop.f32.mrb[10].mxu0  ;;  %761 = vmatprep.subr.bf16.mxu1 %v760_v55  ;;  %v492_v1 = vmax.f32 %v463_v58, 0.0 }
  0xfe   : > { %v467_v60 = vadd.f32 %v466_v59, %v326_v57  ;;  %v468_v61 = vpop.f32.mrb[11].mxu0  ;;  %763 = vmatpush1.bf16.msra.mxu1 %v762_v52 }
  0xff   : > { %v469_v62 = vadd.f32 %v468_v61, %v326_v57 }
 0x100   : > { %v493_v0 = vmax.f32 %v467_v60, 0.0 }
 0x101   : > { %v494_v2 = vmax.f32 %v469_v62, 0.0  ;;  %v472_v3 = vpop.f32.mrb[12].mxu0 }
 0x102   : > { %v766_v4 = vpack.c.bf16 %v493_v0, %v491_v63  ;;  %v474_v5 = vpop.f32.mrb[13].mxu0  ;;  %v473_v9 = vadd.f32 %v472_v3, %v331_v7 }
 0x103   : > { %v764_v8 = vpack.c.bf16 %v494_v2, %v492_v1  ;;  %v475_v11 = vadd.f32 %v474_v5, %v331_v7 }
 0x104   : > { %v495_v16 = vmax.f32 %v473_v9, 0.0 }
 0x105   : > { %v478_v12 = vpop.f32.mrb[14].mxu0  ;;  %765 = vmatprep.subr.bf16.mxu1 %v764_v8  ;;  %v496_v18 = vmax.f32 %v475_v11, 0.0 }
 0x106   : > { %v479_v13 = vadd.f32 %v478_v12, %v336_v10  ;;  %v480_v14 = vpop.f32.mrb[15].mxu0  ;;  %767 = vmatpush1.bf16.msra.mxu1 %v766_v4 }
 0x107   : > { %v481_v15 = vadd.f32 %v480_v14, %v336_v10 }
 0x108   : > { %v497_v17 = vmax.f32 %v479_v13, 0.0 }
 0x109   : > { %v498_v19 = vmax.f32 %v481_v15, 0.0 }
 0x10a   : > { %v770_v20 = vpack.c.bf16 %v497_v17, %v495_v16 }
 0x10b   : > { %v768_v21 = vpack.c.bf16 %v498_v19, %v496_v18 }
 0x10d   : > { %769 = vmatprep.subr.bf16.mxu1 %v768_v21 }
 0x10e   : > { %771 = vmatpush1.bf16.msra.mxu1 %v770_v20 }
 0x111   : > { %749 = vmatmul.mubr.msk.f32.vlgmr.msra.gmra.mrb[0].mxu1 %vm506_vm2, %v499_v22 }
 0x1e4   : > { %v576_v24 = vpop.f32.mrb[0].mxu1 }
 0x1e5   : > { %v577_v25 = vadd.f32 %v576_v24, %v504_v23  ;;  %v578_v26 = vpop.f32.mrb[1].mxu1 }
 0x1e6   : > { %v579_v27 = vadd.f32 %v578_v26, %v504_v23 }
 0x1e7   : > { %v750_v28 = vmul.f32 -1.442695, %v577_v25 }
 0x1e8   : > { %v751_v29 = vmul.f32 -1.442695, %v579_v27 }
 0x1e9   : > { %801 = vpow2.f32 %v750_v28 }
 0x1ea   : > { %803 = vpow2.f32 %v751_v29 }
 0x1f3   : > { %v802_v30 = vpop.eup %801 }
 0x1f4   : > { %v804_v31 = vpop.eup %803  ;;  %v589_v32 = vadd.f32 1.0, %v802_v30 }
 0x1f5   : > { %v590_v33 = vadd.f32 1.0, %v804_v31 }
 0x1f6   : > { %805 = vrcp.f32 %v589_v32 }
 0x1f7   : > { %807 = vrcp.f32 %v590_v33 }
 0x1f8   : > { %809 = vtanh.f32 %v577_v25 }
 0x1f9   : > { %811 = vtanh.f32 %v579_v27 }
 0x200   : > { %v806_v36 = vpop.eup %805 }
 0x201   : > { %v808_v38 = vpop.eup %807  ;;  %v605_v39 = vsub.f32 1.0, %v806_v36  ;;  %v598_v42 = vrot.slane %v806_v36, %v597_v37 }
 0x202   : > { %v606_v40 = vsub.f32 1.0, %v808_v38  ;;  %v602_v44 = vrot.slane %v808_v38, %v597_v37  ;;  %v810_v46 = vpop.eup %809 }
 0x203   : > { %v610_v41 = vrot.slane %v605_v39, %v597_v37  ;;  %v603_v47 = vmul.f32 %v810_v46, %v598_v42  ;;  %v812_v49 = vpop.eup %811 }
 0x204   : > { %v614_v43 = vrot.slane %v606_v40, %v597_v37  ;;  %v604_v50 = vmul.f32 %v812_v49, %v602_v44 }
 0x206   : > { %v617_v45 = vcombine.low %v610_v41, %v614_v43 }
 0x208   : > { %v619_v48 = vmul.f32 %v617_v45, %v907_v6 }
 0x20a   : > { %v621_v51 = vcombine.high %v619_v48, %v619_v48  ;;  %v623_v52 = vadd.f32 %v619_v48, %v603_v47 }
 0x20c   : > { %v624_v53 = vadd.f32 %v621_v51, %v604_v50 }
 0x20e   : > { %v627_v54 = vcombine.low %v623_v52, %v624_v53 }
 0x210   : > { %629 = vst [vmem:[%s279_s25] sm:$0x77] %v627_v54 }
 0x211 PF: > { %s15_s20 = sadd.s32 1, %s835_s20   ;;  %s984_s18 = smov %s831_s19 }
 0x212   : > { %p12_p5 = scmp.ge.s32.totalorder %s15_s20, 4   ;;  %s985_s19 = smov %s987_s21 }
 0x214   :  { %14 = sbr.rel (!%p12_p5) target bundleno = 2 (0x2), region = 73 }

</bundles_post_ra>
